<compile_context>
chip_gen: v5e
topology: v5e:2x2
jax: 0.10.0
libtpu: 0.0.40
codegen_flags: <defaults>
</compile_context>

<pallas_src>
import functools
import math

import jax
import jax.numpy as jnp
from jax.experimental import pallas as pl
from jax.experimental.pallas import tpu as pltpu


def _flatten_dma_kernel(x_hbm, o_hbm, sem, *, rows_per_chunk):
    """One grid step: copy `rows_per_chunk` contiguous rows HBM -> HBM."""
    i = pl.program_id(0)
    start = pl.multiple_of(i * rows_per_chunk, rows_per_chunk)
    cp = pltpu.make_async_copy(
        x_hbm.at[pl.ds(start, rows_per_chunk)],
        o_hbm.at[pl.ds(start, rows_per_chunk)],
        sem,
    )
    cp.start()
    cp.wait()


def flatten(x, *, num_chunks=2):
    """Pallas equivalent of Flatten.forward: x.view(-1, prod(x.shape[1:]))."""
    n = x.shape[0]
    flat = math.prod(x.shape[1:])

    # Free, metadata-only reshape for a contiguous input (== torch .view).
    # TODO(synk): in production return `x2` directly and skip the pallas_call;
    # the reshape alone moves zero bytes, any kernel pays 2x array bytes of HBM.
    x2 = jnp.reshape(x, (n, flat))

    # Split rows into `num_chunks` equal DMAs so v7x's two TensorCores each
    # issue one ("parallel" grid axis); fall back to one chunk otherwise.
    if num_chunks < 1 or n % num_chunks != 0:
        num_chunks = 1
    rows_per_chunk = n // num_chunks

    kernel = functools.partial(_flatten_dma_kernel, rows_per_chunk=rows_per_chunk)

    return pl.pallas_call(
        kernel,
        out_shape=jax.ShapeDtypeStruct((n, flat), x.dtype),
        grid_spec=pltpu.PrefetchScalarGridSpec(
            num_scalar_prefetch=0,
            grid=(num_chunks,),
            in_specs=[pl.BlockSpec(memory_space=pl.ANY)],   # raw HBM ref, no auto-DMA
            out_specs=pl.BlockSpec(memory_space=pl.ANY),    # kernel DMAs into it
            scratch_shapes=[pltpu.SemaphoreType.DMA],
        ),
        compiler_params=pltpu.CompilerParams(
            dimension_semantics=("parallel",),
        ),
    )(x2)


if __name__ == "__main__":
    key = jax.random.PRNGKey(0)
    # Small NCHW input consistent with a conv-net feature map feeding Flatten.
    x = jax.random.normal(key, (2, 4, 16, 16), dtype=jnp.float32)

    out = flatten(x)
    jax.block_until_ready(out)

    # Verify semantics against plain JAX reshape (== torch .view on contiguous).
    ref = x.reshape(x.shape[0], -1)
    assert out.shape == (2, 4 * 16 * 16), out.shape
    assert jnp.array_equal(out, ref), "mismatch vs reference reshape"

    print("KERNEL_OK")
</pallas_src>

<mosaic_0001>
module attributes {stable_mosaic.version = 11 : i64} {
  func.func @_flatten_dma_kernel(%arg0: i32, %arg1: memref<2x1024xf32, #tpu.memory_space<any>>, %arg2: memref<2x1024xf32, #tpu.memory_space<any>>, %arg3: memref<!tpu.dma_semaphore, #tpu.memory_space<semaphore_mem>>) attributes {dimension_semantics = [#tpu.dimension_semantics<parallel>], iteration_bounds = array<i64: 2>, scalar_prefetch = 0 : i64, scratch_operands = 1 : i64, tpu.core_type = #tpu.core_type<tc>, window_params = [{}, {}]} {
    %c1_i32 = arith.constant 1 : i32
    %0 = arith.muli %arg0, %c1_i32 : i32
    %1 = tpu.assume_multiple %0, 1 : i32
    %c0_i32 = arith.constant 0 : i32
    %2 = tpu.memref_slice %arg1[%1, %c0_i32] : memref<2x1024xf32, #tpu.memory_space<any>> -> memref<1x1024xf32, #tpu.memory_space<any>>
    %c0_i32_0 = arith.constant 0 : i32
    %3 = tpu.memref_slice %arg2[%1, %c0_i32_0] : memref<2x1024xf32, #tpu.memory_space<any>> -> memref<1x1024xf32, #tpu.memory_space<any>>
    tpu.enqueue_dma source(%2 : memref<1x1024xf32, #tpu.memory_space<any>>) target(%3 : memref<1x1024xf32, #tpu.memory_space<any>>) target_semaphore(%arg3 : memref<!tpu.dma_semaphore, #tpu.memory_space<semaphore_mem>>)
    %c0_i32_1 = arith.constant 0 : i32
    %4 = tpu.memref_slice %arg1[%1, %c0_i32_1] : memref<2x1024xf32, #tpu.memory_space<any>> -> memref<1x1024xf32, #tpu.memory_space<any>>
    %c0_i32_2 = arith.constant 0 : i32
    %5 = tpu.memref_slice %arg2[%1, %c0_i32_2] : memref<2x1024xf32, #tpu.memory_space<any>> -> memref<1x1024xf32, #tpu.memory_space<any>>
    tpu.wait_dma2 semaphore(%arg3 : memref<!tpu.dma_semaphore, #tpu.memory_space<semaphore_mem>>) src(%4 : memref<1x1024xf32, #tpu.memory_space<any>>) dst(%5 : memref<1x1024xf32, #tpu.memory_space<any>>)
    return
  }
}

</mosaic_0001>

<bundles_post_ra>
// kernel: tpu_custom_call.1
= control target key start
LH: loop header
LB: loop body
LE: loop exit
PB: predicated region body
PF: predicated region fallthrough
CT: control target
= control target key end

     0   :  { %s78_s6 = smov 0   ;;  %s103_s0 = inlined_call_operand.hbm [shape: f32[2,1024], index: 0, kind: input, shape index: {}]   ;;  %s104_s1 = inlined_call_operand.hbm [shape: f32[2,1024], index: 1, kind: output, shape index: {}]  }
   0x1 LB: > { %s13_s7 = sshrl.u32 %s80_s6, 1  ;;  %s14_s8 = sand.u32 1, %s80_s6   ;;  %s80_s6 = sphi %s78_s6, %s11_s6  }
   0x2   : > { %s57_s9 = sshll.u32 %s13_s7, 4  ;;  %s82_s11 = smov 32  }
   0x3   : > { %s16_s10 = sadd.s32 %s57_s9, %s14_s8  ;;  %30 = sst [smem:[#allocation4]] %s82_s11 }
   0x4   : > { %s17_s14 = scalar_lea.hbm %s103_s0, %s16_s10  ;;  %s18_s17 = scalar_lea.hbm %s104_s1, %s16_s10 }
   0x5   : > { %s23_s18 = sshll.u32 %s17_s14, 4  ;;  %s25_s19 = sshll.u32 %s18_s17, 4  ;;  %s24_s18 = int_to_ptr.hbm [resolvable:$true] %s23_s18  ;;  %s26_s19 = int_to_ptr.hbm [resolvable:$true] %s25_s19 }
   0x6   : > { %32 = sst [smem:[#allocation4 + $0x1]] %s82_s11  ;;  %s83_s20 = smov 1  }
   0x7   : > { %34 = sst [smem:[#allocation4 + $0x2]] %s83_s20  ;;  %s84_s21 = smov [#allocation2]  }
   0x8   : > { %s85_s22 = smov [#allocation3]   ;;  %s86_s23 = smov 0  }
   0x9   : > { %36 = dma.general %s24_s18, 128, %s26_s19, %s84_s21, %s85_s22, [#allocation4], %s86_s23, 0  }
   0xa   : > { %76 = dma.done.wait [#allocation2], 128 }
   0xb   : > { %77 = vsyncadd [#allocation2], 4294967168  ;;  %s11_s6 = sadd.s32 1, %s80_s6  }
   0xc   : > { %p8_p0 = scmp.ge.s32.totalorder %s11_s6, 2  }
   0xe   :  { %10 = sbr.rel (!%p8_p0) target bundleno = 1 (0x1), region = 23 }
  0x13   :  { %40 = vsyncmov [#allocation2] }
  0x16   :  { %s41_s24 = vpop.sfrf %40 }
  0x17   :  { %p58_p1 = scmp.ne.s32.totalorder %s41_s24, 0 }
  0x19   :  { %45 = shalt.err (%p58_p1)  }

</bundles_post_ra>
